<compile_context>
chip_gen: v7x
topology: tpu7x:2x2x1
jax: 0.10.0
libtpu: 0.0.40
codegen_flags: <defaults>
</compile_context>

<pallas_src>
import jax
import jax.numpy as jnp
from jax.experimental import pallas as pl
from jax.experimental.pallas import tpu as pltpu


LATENT, G_HIDDEN, IMG_DIM, D_HIDDEN = 32, 64, 256, 64


def gan_kernel(x_ref,
               gw1_ref, gb1_ref, gw2_ref, gb2_ref,
               dw1_ref, db1_ref, dw2_ref, db2_ref,
               out_ref):
    x = x_ref[...]                                               # (tb, 32) f32

    # ---- Generator ----  (bf16 operands on the MXU, f32 accumulation)
    h = jnp.dot(x.astype(jnp.bfloat16), gw1_ref[...],
                preferred_element_type=jnp.float32) + gb1_ref[...]
    h = jnp.maximum(h, 0.0)                                      # ReLU
    img = jnp.dot(h.astype(jnp.bfloat16), gw2_ref[...],
                  preferred_element_type=jnp.float32) + gb2_ref[...]
    img = jnp.tanh(img)                                          # fake "image"

    # ---- Discriminator ----
    d = jnp.dot(img.astype(jnp.bfloat16), dw1_ref[...],
                preferred_element_type=jnp.float32) + db1_ref[...]
    d = jnp.where(d > 0, d, 0.2 * d)                             # LeakyReLU(0.2)

    # Final 64 -> 1 layer as VPU multiply + lane reduction (dw2 stored as a (1, 64) row)
    # instead of a lane-sparse N=1 MXU matmul.
    logit = jnp.sum(d * dw2_ref[...], axis=-1, keepdims=True) + db2_ref[...]
    prob = jax.nn.sigmoid(logit)                                 # (tb, 1) f32

    # Lane-dense store: broadcast the probability across 128 lanes; wrapper slices col 0.
    out_ref[...] = jnp.broadcast_to(prob, out_ref.shape)


def gan_forward(x, params, *, max_tile_b=256):
    """Fused GAN forward pass in one Pallas call; returns (B, 1) probabilities."""
    B, latent = x.shape
    assert latent == LATENT

    # Pad batch to a multiple of 16 (bf16 sublane packing), then tile the batch axis.
    b_pad = max(16, int(pl.cdiv(B, 16)) * 16)
    tile_b = min(b_pad, max_tile_b)
    b_pad = int(pl.cdiv(b_pad, tile_b)) * tile_b
    if b_pad != B:
        x = jnp.pad(x, ((0, b_pad - B), (0, 0)))
    nb = b_pad // tile_b

    # Weights / biases: full-array blocks with a constant index_map -> VMEM-resident
    # across all grid steps (no re-DMA of the ~70 KB of bf16 weights per step).
    weight_specs = [pl.BlockSpec(p.shape, lambda i: (0, 0)) for p in params]

    out = pl.pallas_call(
        gan_kernel,
        out_shape=jax.ShapeDtypeStruct((b_pad, 128), jnp.float32),
        grid_spec=pltpu.PrefetchScalarGridSpec(
            num_scalar_prefetch=0,
            grid=(nb,),
            in_specs=[pl.BlockSpec((tile_b, LATENT), lambda i: (i, 0))] + weight_specs,
            out_specs=pl.BlockSpec((tile_b, 128), lambda i: (i, 0)),
        ),
        compiler_params=pltpu.CompilerParams(
            dimension_semantics=("parallel",),          # shard batch tiles across TCs (v7x)
            vmem_limit_bytes=32 * 1024 * 1024,          # explicit scoped-VMEM limit, lots of headroom
        ),
    )(x, *params)

    return out[:B, :1]


def init_params(key, latent=LATENT, g_hidden=G_HIDDEN, img_dim=IMG_DIM, d_hidden=D_HIDDEN):
    ks = jax.random.split(key, 8)

    def lin(kw, kb, fan_in, fan_out, w_dtype):
        # deterministic, torch-Linear-like uniform init; weights stored (in, out)
        bound = 1.0 / jnp.sqrt(fan_in)
        w = jax.random.uniform(kw, (fan_in, fan_out), jnp.float32, -bound, bound)
        b = jax.random.uniform(kb, (1, fan_out), jnp.float32, -bound, bound)
        return w.astype(w_dtype), b

    gw1, gb1 = lin(ks[0], ks[1], latent, g_hidden, jnp.bfloat16)
    gw2, gb2 = lin(ks[2], ks[3], g_hidden, img_dim, jnp.bfloat16)
    dw1, db1 = lin(ks[4], ks[5], img_dim, d_hidden, jnp.bfloat16)
    # Final 64 -> 1 layer kept f32 and stored as a (1, 64) row for the VPU reduction.
    dw2, db2 = lin(ks[6], ks[7], d_hidden, 1, jnp.float32)
    dw2_row = dw2.reshape(1, d_hidden)
    return (gw1, gb1, gw2, gb2, dw1, db1, dw2_row, db2)


def reference_forward(x, params):
    """Pure-JAX reference with the same bf16-operand / f32-accumulate precision."""
    gw1, gb1, gw2, gb2, dw1, db1, dw2_row, db2 = params
    f32 = jnp.float32
    h = jnp.maximum(
        jnp.dot(x.astype(jnp.bfloat16), gw1, preferred_element_type=f32) + gb1, 0.0)
    img = jnp.tanh(
        jnp.dot(h.astype(jnp.bfloat16), gw2, preferred_element_type=f32) + gb2)
    d = jnp.dot(img.astype(jnp.bfloat16), dw1, preferred_element_type=f32) + db1
    d = jnp.where(d > 0, d, 0.2 * d)
    logit = jnp.sum(d * dw2_row, axis=-1, keepdims=True) + db2
    return jax.nn.sigmoid(logit)


if __name__ == "__main__":
    key = jax.random.PRNGKey(0)
    k_x, k_p = jax.random.split(key)

    batch = 8
    x = jax.random.normal(k_x, (batch, LATENT), jnp.float32)
    params = init_params(k_p)

    out = jax.block_until_ready(gan_forward(x, params))
    ref = reference_forward(x, params)

    assert out.shape == (batch, 1), out.shape
    assert jnp.allclose(out, ref, atol=2e-3, rtol=2e-3), (
        f"mismatch vs reference: max |diff| = {float(jnp.max(jnp.abs(out - ref)))}")

    print("KERNEL_OK")
</pallas_src>

<mosaic_0001>
module attributes {stable_mosaic.version = 11 : i64} {
  func.func @gan_kernel(%arg0: i32, %arg1: memref<16x32xf32, #tpu.memory_space<vmem>>, %arg2: memref<32x64xbf16, #tpu.memory_space<vmem>>, %arg3: memref<1x64xf32, #tpu.memory_space<vmem>>, %arg4: memref<64x256xbf16, #tpu.memory_space<vmem>>, %arg5: memref<1x256xf32, #tpu.memory_space<vmem>>, %arg6: memref<256x64xbf16, #tpu.memory_space<vmem>>, %arg7: memref<1x64xf32, #tpu.memory_space<vmem>>, %arg8: memref<1x64xf32, #tpu.memory_space<vmem>>, %arg9: memref<1x1xf32, #tpu.memory_space<vmem>>, %arg10: memref<16x128xf32, #tpu.memory_space<vmem>>) attributes {dimension_semantics = [#tpu.dimension_semantics<parallel>], iteration_bounds = array<i64: 1>, scalar_prefetch = 0 : i64, scratch_operands = 0 : i64, tpu.core_type = #tpu.core_type<tc>, window_params = [{transform_indices = @transform_0, window_bounds = array<i64: 16, 32>}, {pipeline_mode = #tpu.pipeline_mode<synchronous>, transform_indices = @transform_1, window_bounds = array<i64: 32, 64>}, {pipeline_mode = #tpu.pipeline_mode<synchronous>, transform_indices = @transform_2, window_bounds = array<i64: 1, 64>}, {pipeline_mode = #tpu.pipeline_mode<synchronous>, transform_indices = @transform_3, window_bounds = array<i64: 64, 256>}, {pipeline_mode = #tpu.pipeline_mode<synchronous>, transform_indices = @transform_4, window_bounds = array<i64: 1, 256>}, {pipeline_mode = #tpu.pipeline_mode<synchronous>, transform_indices = @transform_5, window_bounds = array<i64: 256, 64>}, {pipeline_mode = #tpu.pipeline_mode<synchronous>, transform_indices = @transform_6, window_bounds = array<i64: 1, 64>}, {pipeline_mode = #tpu.pipeline_mode<synchronous>, transform_indices = @transform_7, window_bounds = array<i64: 1, 64>}, {pipeline_mode = #tpu.pipeline_mode<synchronous>, transform_indices = @transform_8, window_bounds = array<i64: 1, 1>}, {transform_indices = @transform_9, window_bounds = array<i64: 16, 128>}]} {
    %c0 = arith.constant 0 : index
    %c0_0 = arith.constant 0 : index
    %0 = vector.load %arg1[%c0, %c0_0] : memref<16x32xf32, #tpu.memory_space<vmem>>, vector<16x32xf32>
    %1 = arith.truncf %0 : vector<16x32xf32> to vector<16x32xbf16>
    %c0_1 = arith.constant 0 : index
    %c0_2 = arith.constant 0 : index
    %2 = vector.load %arg2[%c0_1, %c0_2] : memref<32x64xbf16, #tpu.memory_space<vmem>>, vector<32x64xbf16>
    %cst = arith.constant dense<0.000000e+00> : vector<16x64xf32>
    %3 = tpu.matmul %1, %2, %cst {dimension_numbers = #tpu.dot_dimension_numbers<[1], [0], [0], [1], [0, 0, 1, 1], [], []>} : vector<16x32xbf16>, vector<32x64xbf16>, vector<16x64xf32> -> vector<16x64xf32>
    %c0_3 = arith.constant 0 : index
    %c0_4 = arith.constant 0 : index
    %4 = vector.load %arg3[%c0_3, %c0_4] : memref<1x64xf32, #tpu.memory_space<vmem>>, vector<1x64xf32>
    %5 = vector.broadcast %4 : vector<1x64xf32> to vector<16x64xf32>
    %6 = arith.addf %3, %5 : vector<16x64xf32>
    %cst_5 = arith.constant 0.000000e+00 : f32
    %7 = vector.broadcast %cst_5 : f32 to vector<16x64xf32>
    %8 = arith.maximumf %6, %7 : vector<16x64xf32>
    %9 = arith.truncf %8 : vector<16x64xf32> to vector<16x64xbf16>
    %c0_6 = arith.constant 0 : index
    %c0_7 = arith.constant 0 : index
    %10 = vector.load %arg4[%c0_6, %c0_7] : memref<64x256xbf16, #tpu.memory_space<vmem>>, vector<64x256xbf16>
    %cst_8 = arith.constant dense<0.000000e+00> : vector<16x256xf32>
    %11 = tpu.matmul %9, %10, %cst_8 {dimension_numbers = #tpu.dot_dimension_numbers<[1], [0], [0], [1], [0, 0, 1, 1], [], []>} : vector<16x64xbf16>, vector<64x256xbf16>, vector<16x256xf32> -> vector<16x256xf32>
    %c0_9 = arith.constant 0 : index
    %c0_10 = arith.constant 0 : index
    %12 = vector.load %arg5[%c0_9, %c0_10] : memref<1x256xf32, #tpu.memory_space<vmem>>, vector<1x256xf32>
    %13 = vector.broadcast %12 : vector<1x256xf32> to vector<16x256xf32>
    %14 = arith.addf %11, %13 : vector<16x256xf32>
    %15 = math.tanh %14 : vector<16x256xf32>
    %16 = arith.truncf %15 : vector<16x256xf32> to vector<16x256xbf16>
    %c0_11 = arith.constant 0 : index
    %c0_12 = arith.constant 0 : index
    %17 = vector.load %arg6[%c0_11, %c0_12] : memref<256x64xbf16, #tpu.memory_space<vmem>>, vector<256x64xbf16>
    %cst_13 = arith.constant dense<0.000000e+00> : vector<16x64xf32>
    %18 = tpu.matmul %16, %17, %cst_13 {dimension_numbers = #tpu.dot_dimension_numbers<[1], [0], [0], [1], [0, 0, 1, 1], [], []>} : vector<16x256xbf16>, vector<256x64xbf16>, vector<16x64xf32> -> vector<16x64xf32>
    %c0_14 = arith.constant 0 : index
    %c0_15 = arith.constant 0 : index
    %19 = vector.load %arg7[%c0_14, %c0_15] : memref<1x64xf32, #tpu.memory_space<vmem>>, vector<1x64xf32>
    %20 = vector.broadcast %19 : vector<1x64xf32> to vector<16x64xf32>
    %21 = arith.addf %18, %20 : vector<16x64xf32>
    %cst_16 = arith.constant 0.000000e+00 : f32
    %22 = vector.broadcast %cst_16 : f32 to vector<16x64xf32>
    %23 = arith.cmpf ogt, %21, %22 : vector<16x64xf32>
    %cst_17 = arith.constant 2.000000e-01 : f32
    %24 = vector.broadcast %cst_17 : f32 to vector<16x64xf32>
    %25 = arith.mulf %24, %21 : vector<16x64xf32>
    %26 = arith.select %23, %21, %25 : vector<16x64xi1>, vector<16x64xf32>
    %c0_18 = arith.constant 0 : index
    %c0_19 = arith.constant 0 : index
    %27 = vector.load %arg8[%c0_18, %c0_19] : memref<1x64xf32, #tpu.memory_space<vmem>>, vector<1x64xf32>
    %28 = vector.broadcast %27 : vector<1x64xf32> to vector<16x64xf32>
    %29 = arith.mulf %26, %28 : vector<16x64xf32>
    %cst_20 = arith.constant dense<0.000000e+00> : vector<16xf32>
    %30 = vector.multi_reduction <add>, %29, %cst_20 [1] : vector<16x64xf32> to vector<16xf32>
    %31 = vector.shape_cast %30 : vector<16xf32> to vector<16x1xf32>
    %c0_21 = arith.constant 0 : index
    %c0_22 = arith.constant 0 : index
    %32 = vector.load %arg9[%c0_21, %c0_22] : memref<1x1xf32, #tpu.memory_space<vmem>>, vector<1x1xf32>
    %33 = vector.broadcast %32 : vector<1x1xf32> to vector<16x1xf32>
    %34 = arith.addf %31, %33 : vector<16x1xf32>
    %35 = arith.negf %34 : vector<16x1xf32>
    %36 = math.exp %35 : vector<16x1xf32>
    %cst_23 = arith.constant 1.000000e+00 : f32
    %37 = vector.broadcast %cst_23 : f32 to vector<16x1xf32>
    %38 = arith.addf %37, %36 : vector<16x1xf32>
    %39 = arith.divf %37, %38 : vector<16x1xf32>
    %40 = vector.shape_cast %39 : vector<16x1xf32> to vector<16x1xf32>
    %41 = vector.broadcast %40 : vector<16x1xf32> to vector<16x128xf32>
    %c0_24 = arith.constant 0 : index
    %c0_25 = arith.constant 0 : index
    %42 = vector.load %arg10[%c0_24, %c0_25] : memref<16x128xf32, #tpu.memory_space<vmem>>, vector<16x128xf32>
    tpu.vector_store %arg10[%c0_24, %c0_25], %41 {strides = array<i32>} : memref<16x128xf32, #tpu.memory_space<vmem>>, vector<16x128xf32>,
    return
  }
  func.func @transform_0(%arg0: i32) -> (i32, i32) {
    %c0_i32 = arith.constant 0 : i32
    %c0_i32_0 = arith.constant 0 : i32
    return %arg0, %c0_i32 : i32, i32
  }
  func.func @transform_1(%arg0: i32) -> (i32, i32) {
    %c0_i32 = arith.constant 0 : i32
    %c0_i32_0 = arith.constant 0 : i32
    %c0_i32_1 = arith.constant 0 : i32
    return %c0_i32, %c0_i32_0 : i32, i32
  }
  func.func @transform_2(%arg0: i32) -> (i32, i32) {
    %c0_i32 = arith.constant 0 : i32
    %c0_i32_0 = arith.constant 0 : i32
    %c0_i32_1 = arith.constant 0 : i32
    return %c0_i32, %c0_i32_0 : i32, i32
  }
  func.func @transform_3(%arg0: i32) -> (i32, i32) {
    %c0_i32 = arith.constant 0 : i32
    %c0_i32_0 = arith.constant 0 : i32
    %c0_i32_1 = arith.constant 0 : i32
    return %c0_i32, %c0_i32_0 : i32, i32
  }
  func.func @transform_4(%arg0: i32) -> (i32, i32) {
    %c0_i32 = arith.constant 0 : i32
    %c0_i32_0 = arith.constant 0 : i32
    %c0_i32_1 = arith.constant 0 : i32
    return %c0_i32, %c0_i32_0 : i32, i32
  }
  func.func @transform_5(%arg0: i32) -> (i32, i32) {
    %c0_i32 = arith.constant 0 : i32
    %c0_i32_0 = arith.constant 0 : i32
    %c0_i32_1 = arith.constant 0 : i32
    return %c0_i32, %c0_i32_0 : i32, i32
  }
  func.func @transform_6(%arg0: i32) -> (i32, i32) {
    %c0_i32 = arith.constant 0 : i32
    %c0_i32_0 = arith.constant 0 : i32
    %c0_i32_1 = arith.constant 0 : i32
    return %c0_i32, %c0_i32_0 : i32, i32
  }
  func.func @transform_7(%arg0: i32) -> (i32, i32) {
    %c0_i32 = arith.constant 0 : i32
    %c0_i32_0 = arith.constant 0 : i32
    %c0_i32_1 = arith.constant 0 : i32
    return %c0_i32, %c0_i32_0 : i32, i32
  }
  func.func @transform_8(%arg0: i32) -> (i32, i32) {
    %c0_i32 = arith.constant 0 : i32
    %c0_i32_0 = arith.constant 0 : i32
    %c0_i32_1 = arith.constant 0 : i32
    return %c0_i32, %c0_i32_0 : i32, i32
  }
  func.func @transform_9(%arg0: i32) -> (i32, i32) {
    %c0_i32 = arith.constant 0 : i32
    %c0_i32_0 = arith.constant 0 : i32
    return %arg0, %c0_i32 : i32, i32
  }
}

</mosaic_0001>

<bundles_post_ra>
// kernel: tpu_custom_call.1
= control target key start
LH: loop header
LB: loop body
LE: loop exit
PB: predicated region body
PF: predicated region fallthrough
CT: control target
= control target key end

     0   :  { %s784_s0 = inlined_call_operand.vmem [shape: f32[16,32], index: 0, kind: input, shape index: {}]   ;;  %s785_s1 = inlined_call_operand.vmem [shape: bf16[32,64], index: 1, kind: input, shape index: {}]   ;;  %s786_s2 = inlined_call_operand.vmem [shape: f32[1,64], index: 2, kind: input, shape index: {}]   ;;  %s787_s3 = inlined_call_operand.vmem [shape: bf16[64,256], index: 3, kind: input, shape index: {}]   ;;  %s788_s4 = inlined_call_operand.vmem [shape: f32[1,256], index: 4, kind: input, shape index: {}]   ;;  %s789_s5 = inlined_call_operand.vmem [shape: bf16[256,64], index: 5, kind: input, shape index: {}]   ;;  %s790_s6 = inlined_call_operand.vmem [shape: f32[1,64], index: 6, kind: input, shape index: {}]   ;;  %s791_s7 = inlined_call_operand.vmem [shape: f32[1,64], index: 7, kind: input, shape index: {}]   ;;  %s792_s8 = inlined_call_operand.<no memory space> [shape: f32[1,1], index: 8, kind: input, shape index: {}]   ;;  %s793_s9 = inlined_call_operand.hbm [shape: f32[16,128], index: 9, kind: output, shape index: {}]  }
   0x1   :  { %v14_v0 = vstv %s792_s8 }
   0x2   :  { %15 = vst [vmem:[#allocation2] sm:$0x1] %v14_v0 }
   0x3   :  { %v544_v1 = vld [vmem:[%s785_s1] sm:$0xff]   ;;  %v614_v2 = vmov 0.0   ;;  %v545_v3 = vld [vmem:[%s785_s1 + $0x8] sm:$0xff]   ;;  %vm615_vm0 = vmmov 0   ;;  %v551_v9 = vld [vmem:[%s787_s3 + $0x14] ss:$8 sps:$4 sm:$0xff]  }
   0x4   :  { %528 = vmatprep.subr.bf16.mxu1 %v614_v2  ;;  %532 = vmatprep.mubr.msk.bf16.mxu1 %vm615_vm0, %v614_v2  ;;  %v36_v4 = vld [vmem:[%s784_s0] sm:$0xff]  ;;  %v37_v5 = vld [vmem:[%s784_s0 + $0x8] sm:$0xff]  ;;  %vm62_vm1 = vcmask 261120   ;;  %v549_v10 = vld [vmem:[%s787_s3 + $0x10] ss:$8 sps:$4 sm:$0xff]  }
   0x5   :  { %529 = vmatpush3.bf16.msra.mxu1 %v544_v1  ;;  %v548_v6 = vld [vmem:[%s787_s3 + $0x4] ss:$8 sps:$4 sm:$0xff]   ;;  %v38_v7 = vpack.c.bf16 %v37_v5, %v36_v4  ;;  %v546_v8 = vld [vmem:[%s787_s3] ss:$8 sps:$4 sm:$0xff]  }
   0x6   :  { %530 = vmatprep.subr.bf16.mxu1 %v614_v2 }
   0x9   :  { %531 = vmatpush3.bf16.msra.mxu1 %v545_v3 }
   0xa   :  { %174 = vmatprep.subr.bf16.mxu1 %v548_v6 }
   0xc   :  { %533 = vmatmul.mubr.msk.bf16.vlgmr.msra.gmra.mrb[0].mxu1 %vm62_vm1, %v38_v7 }
   0xd   :  { %175 = vmatpush1.bf16.msra.mxu1 %v546_v8 }
   0xe   :  { %176 = vmatprep.subr.bf16.mxu1 %v551_v9 }
  0x11   :  { %177 = vmatpush1.bf16.msra.mxu1 %v549_v10 }
  0x12   :  { %16 = vsyncpa [#allocation4], 0  ;;  %v554_v11 = vld [vmem:[%s787_s3 + $0x24] ss:$8 sps:$4 sm:$0xff]   ;;  %v552_v12 = vld [vmem:[%s787_s3 + $0x20] ss:$8 sps:$4 sm:$0xff]   ;;  %v120_v42 = vlaneseq }
  0x13   :  { %178 = vmatprep.subr.bf16.mxu1 %v554_v11  ;;  %v557_v13 = vld [vmem:[%s787_s3 + $0x34] ss:$8 sps:$4 sm:$0xff]   ;;  %v555_v14 = vld [vmem:[%s787_s3 + $0x30] ss:$8 sps:$4 sm:$0xff]   ;;  %v616_v15 = vmov 0   ;;  %v558_v16 = vld [vmem:[%s789_s5 + $0x40] sm:$0xff]  }
  0x14   :  { %206 = vmatprep.mubr.bf16.mxu1 %v616_v15  ;;  %542 = vset.pattern.permute.xlu1 %v616_v15  ;;  %v559_v17 = vld [vmem:[%s789_s5] sm:$0xff]   ;;  %v560_v18 = vld [vmem:[%s789_s5 + $0x48] sm:$0xff]   ;;  %v562_v20 = vld [vmem:[%s789_s5 + $0x50] sm:$0xff]   ;;  %vm170_vm2 = vcmask 523264   ;;  %v121_v43 = vshrl.u32 %v120_v42, 7 }
  0x15   :  { %179 = vmatpush1.bf16.msra.mxu1 %v552_v12  ;;  %543 = vset.pattern.permute.xlu0 %v616_v15  ;;  %v561_v19 = vld [vmem:[%s789_s5 + $0x8] sm:$0xff]   ;;  %v563_v21 = vld [vmem:[%s789_s5 + $0x10] sm:$0xff]   ;;  %v469_v22 = vld [vmem:[%s786_s2] ss:$0 sm:$0xff] }
  0x16   :  { %180 = vmatprep.subr.bf16.mxu1 %v557_v13  ;;  %506 = vmatprep.subr.bf16.mxu0 %v558_v16  ;;  %v564_v32 = vld [vmem:[%s789_s5 + $0x58] sm:$0xff]   ;;  %v566_v34 = vld [vmem:[%s789_s5 + $0x60] sm:$0xff]   ;;  %v568_v36 = vld [vmem:[%s789_s5 + $0x68] sm:$0xff]   ;;  %v122_v44 = vsub.s32 0, %v121_v43  ;;  %v126_v46 = vsub.s32 1, %v121_v43 }
  0x17   :  { %507 = vmatpush3.bf16.msra.mxu0 %v559_v17  ;;  %v565_v33 = vld [vmem:[%s789_s5 + $0x18] sm:$0xff]   ;;  %v567_v35 = vld [vmem:[%s789_s5 + $0x20] sm:$0xff]   ;;  %v569_v37 = vld [vmem:[%s789_s5 + $0x28] sm:$0xff]  }
  0x18   :  { %508 = vmatprep.subr.bf16.mxu0 %v560_v18  ;;  %v570_v38 = vld [vmem:[%s789_s5 + $0x70] sm:$0xff]   ;;  %v572_v40 = vld [vmem:[%s789_s5 + $0x78] sm:$0xff]   ;;  %v118_v45 = vld [vmem:[%s788_s4] sm:$0x3] }
  0x19   :  { %181 = vmatpush1.bf16.msra.mxu1 %v555_v14  ;;  %v571_v39 = vld [vmem:[%s789_s5 + $0x30] sm:$0xff]   ;;  %v573_v41 = vld [vmem:[%s789_s5 + $0x38] sm:$0xff]   ;;  %v123_v47 = vrot.slane %v118_v45, %v122_v44  ;;  %v127_v48 = vrot.slane %v118_v45, %v126_v46  ;;  %v482_v0 = vld [vmem:[%s790_s6] ss:$0 sm:$0xff]  ;;  %s617_s6 = smov [#allocation3]  }
  0x1a   :  { %v499_v9 = vld [vmem:[%s791_s7] ss:$0 sm:$0xff]  ;;  %s458_s7 = sshll.u32 %s617_s6, 4  ;;  %s459_s7 = int_to_ptr.vmem [resolvable:$true] %s458_s7 }
  0x1b   :  { %509 = vmatpush3.bf16.msra.mxu0 %v561_v19  ;;  %v500_v17 = vld [vmem:[#allocation2] ss:$0 sm:$0xff]  ;;  %s590_s21 = scalar_lea.vmem %s459_s7, 256  ;;  %p595_p1 = scmp.lt.s32.totalorder %s459_s7, %s459_s7 }
  0x1c   :  { %510 = vmatprep.subr.bf16.mxu0 %v562_v20  ;;  %p591_p0 = scmp.ne.s32.totalorder %s459_s7, %s590_s21  ;;  %p596_p2 = scmp.lt.s32.totalorder %s590_s21, %s590_s21 }
  0x1e   :  { %p597_p3 = por %p596_p2, %p595_p1 }
  0x1f   :  { %511 = vmatpush3.bf16.msra.mxu0 %v563_v21 }
  0x20   :  { %512 = vmatprep.subr.bf16.mxu0 %v564_v32  ;;  %p598_p4 = pnand %p597_p3, %p591_p0 }
  0x23   :  { %513 = vmatpush3.bf16.msra.mxu0 %v565_v33 }
  0x24   :  { %514 = vmatprep.subr.bf16.mxu0 %v566_v34 }
  0x27   :  { %515 = vmatpush3.bf16.msra.mxu0 %v567_v35 }
  0x28   :  { %516 = vmatprep.subr.bf16.mxu0 %v568_v36 }
  0x2b   :  { %517 = vmatpush3.bf16.msra.mxu0 %v569_v37 }
  0x2c   :  { %518 = vmatprep.subr.bf16.mxu0 %v570_v38 }
  0x2f   :  { %519 = vmatpush3.bf16.msra.mxu0 %v571_v39 }
  0x30   :  { %520 = vmatprep.subr.bf16.mxu0 %v572_v40 }
  0x33   :  { %521 = vmatpush3.bf16.msra.mxu0 %v573_v41 }
  0xdf   :  { %v100_v23 = vpop.f32.mrb[0].mxu1 }
  0xe0   :  { %v101_v24 = vadd.f32 %v469_v22, %v100_v23  ;;  %v534_v25 = vpop.f32.mrb[1].mxu1 }
  0xe1   :  { %v103_v26 = vpop.f32.mrb[2].mxu1 }
  0xe2   :  { %v104_v27 = vadd.f32 %v469_v22, %v103_v26  ;;  %v535_v28 = vpop.f32.mrb[3].mxu1  ;;  %v107_v29 = vmax.f32 %v101_v24, 0.0 }
  0xe4   :  { %v108_v30 = vmax.f32 %v104_v27, 0.0 }
  0xe6   :  { %v109_v31 = vpack.c.bf16 %v108_v30, %v107_v29 }
  0xe8   :  { %481 = vmatmul.mubr.msk.bf16.vlgmr.msra.gmra.mrb[4].mxu1 %vm170_vm2, %v109_v31 }
 0x1bb   :  { %v208_v49 = vpop.f32.mrb[4].mxu1 }
 0x1bc   :  { %v209_v50 = vadd.f32 %v208_v49, %v123_v47  ;;  %v210_v51 = vpop.f32.mrb[5].mxu1 }
 0x1bd   :  { %v211_v52 = vadd.f32 %v210_v51, %v127_v48  ;;  %v212_v53 = vpop.f32.mrb[6].mxu1 }
 0x1be   :  { %574 = vtanh.f32 %v209_v50  ;;  %v213_v54 = vadd.f32 %v212_v53, %v123_v47  ;;  %v214_v55 = vpop.f32.mrb[7].mxu1 }
 0x1bf   :  { %576 = vtanh.f32 %v211_v52  ;;  %v215_v56 = vadd.f32 %v214_v55, %v127_v48 }
 0x1c0   :  { %578 = vtanh.f32 %v213_v54 }
 0x1c1   :  { %580 = vtanh.f32 %v215_v56 }
 0x1c8   :  { %v575_v57 = vpop.eup %574 }
 0x1c9   :  { %v577_v58 = vpop.eup %576 }
 0x1ca   :  { %v579_v59 = vpop.eup %578 }
 0x1cb   :  { %v581_v60 = vpop.eup %580  ;;  %v221_v61 = vpack.c.bf16 %v579_v59, %v575_v57 }
 0x1cc   :  { %v222_v62 = vpack.c.bf16 %v581_v60, %v577_v58 }
 0x1ce   :  { %390 = vmatprep.mubr.bf16.mxu0 %v222_v62 }
 0x1cf   :  { %391 = vmatmul.mubr.bf16.vlgmr.msra.gmra.mrb[0].mxu0 %v221_v61 }
 0x2a2   :  { %v522_v63 = vpop.f32.mrb[0].mxu0 }
 0x2a3   :  { %v523_v1 = vpop.f32.mrb[1].mxu0 }
 0x2a4   :  { %v524_v2 = vadd.f32 %v523_v1, %v522_v63  ;;  %v525_v3 = vpop.f32.mrb[2].mxu0 }
 0x2a5   :  { %v526_v4 = vpop.f32.mrb[3].mxu0 }
 0x2a6   :  { %v393_v5 = vadd.f32 %v524_v2, %v482_v0  ;;  %v527_v6 = vadd.f32 %v526_v4, %v525_v3 }
 0x2a8   :  { %v401_v7 = vmul.f32 0.2, %v393_v5  ;;  %v396_v8 = vadd.f32 %v527_v6, %v482_v0  ;;  %vm399_vm3 = vcmp.gt.f32.partialorder %v393_v5, 0.0 }
 0x2aa   :  { %v402_v10 = vmul.f32 0.2, %v396_v8  ;;  %v403_v11 = vsel %vm399_vm3, %v393_v5, %v401_v7  ;;  %vm400_vm4 = vcmp.gt.f32.partialorder %v396_v8, 0.0 }
 0x2ab   :  { %v412_v12 = vmul.f32 %v499_v9, %v403_v11 }
 0x2ac   :  { %v404_v13 = vsel %vm400_vm4, %v396_v8, %v402_v10 }
 0x2ad   :  { %v414_v14 = vsel %vm170_vm2, %v412_v12, 0.0  ;;  %v413_v15 = vmul.f32 %v499_v9, %v404_v13 }
 0x2ae   :  { %415 = vadd.xlane.f32.xlu0 %v414_v14 }
 0x2af   :  { %v417_v16 = vsel %vm170_vm2, %v413_v15, 0.0 }
 0x2b2   :  { %418 = vadd.xlane.f32.xlu0 %v417_v16 }
 0x33b   :  { %v416_v18 = vpop.xlane.xlu0 %415 }
 0x33c   :  { %v427_v19 = vadd.f32 %v500_v17, %v416_v18 }
 0x33e   :  { %v501_v20 = vmul.f32 -1.442695, %v427_v19 }
 0x33f   :  { %v419_v21 = vpop.xlane.xlu0 %418 }
 0x340   :  { %582 = vpow2.f32 %v501_v20  ;;  %v428_v22 = vadd.f32 %v500_v17, %v419_v21 }
 0x342   :  { %v502_v23 = vmul.f32 -1.442695, %v428_v22 }
 0x344   :  { %584 = vpow2.f32 %v502_v23 }
 0x34a   :  { %v583_v24 = vpop.eup %582 }
 0x34b   :  { %v435_v25 = vadd.f32 1.0, %v583_v24 }
 0x34d   :  { %586 = vrcp.f32 %v435_v25 }
 0x34e   :  { %v585_v26 = vpop.eup %584 }
 0x34f   :  { %v436_v27 = vadd.f32 1.0, %v585_v26 }
 0x351   :  { %588 = vrcp.f32 %v436_v27 }
 0x357   :  { %v587_v28 = vpop.eup %586 }
 0x358   :  { %443 = vperm.xlu1 %542, %v587_v28  }
 0x35b   :  { %v589_v29 = vpop.eup %588 }
 0x35c   :  { %448 = vperm.xlu1 %542, %v589_v29  }
 0x3d7   :  { %v444_v30 = vpop.permute.xlu1 %443 }
 0x3d8   :  { %451 = vst [vmem:[#allocation3] sm:$0xff] %v444_v30 }
 0x3db   :  { %v449_v31 = vpop.permute.xlu1 %448 }
 0x3dc   :  { %452 = vst [vmem:[#allocation3 + $0x8] sm:$0xff] %v449_v31 }
 0x3dd   :  { %601 = shalt.err (!%p598_p4)
}
 0x3de   :  { %s602_s23 = scalar_lea.hbm %s793_s9, 256 }
 0x3df   :  { %p603_p5 = scmp.ne.s32.totalorder %s793_s9, %s602_s23  ;;  %p606_p6 = scmp.lt.u32.totalorder %s602_s23, %s793_s9 }
 0x3e1   :  { %p608_p7 = pnand %p606_p6, %p603_p5 }
 0x3e3   :  { %611 = shalt.err (!%p608_p7)
}
 0x3e4   :  { %s618_s26 = smov 128   ;;  %s619_s27 = smov 8  }
 0x3e5   :  { %464 = dma.vmem_to_hbm [thread:$0]  %s459_s7, 256, %s793_s9, [#allocation4], %s618_s26, %s618_s26, %s619_s27  }
 0x3e6   :  { %612 = dma.done.wait [#allocation4], 256  }
 0x3e7   :  { %613 = vsyncadd [#allocation4], 4294967040 }
 0x3e8   :  { %468 = vsyncpa [#allocation4], 1 }

</bundles_post_ra>
